<compile_context>
chip_gen: v7x
topology: tpu7x:2x2x1
jax: 0.10.0
libtpu: 0.0.40
codegen_flags: <defaults>
</compile_context>

<pallas_src>
import jax
import jax.numpy as jnp
from jax.experimental import pallas as pl
from jax.experimental.pallas import tpu as pltpu


def _fused_copy_kernel(x_ref, y_ref, z_ref, w_ref,
                       xo_ref, yo_ref, zo_ref, wo_ref):
    # Identity copies: the "compute" of squeeze is just moving the bytes.
    xo_ref[...] = x_ref[...]
    yo_ref[...] = y_ref[...]
    zo_ref[...] = z_ref[...]
    wo_ref[...] = w_ref[...]


def fused_pallas_copy(arrs):
    """Route all tensors through ONE Pallas call, lane-dense, aliased in/out."""
    # Lane-dense presentation: flatten each tensor to a single (1, N) row.
    flats = [a.reshape(1, a.size) for a in arrs]
    vmem_spec = pl.BlockSpec(memory_space=pltpu.MemorySpace.VMEM)
    outs = pl.pallas_call(
        _fused_copy_kernel,
        out_shape=tuple(jax.ShapeDtypeStruct(f.shape, f.dtype) for f in flats),
        in_specs=[vmem_spec] * len(flats),
        out_specs=tuple([vmem_spec] * len(flats)),
        # Identity op: alias each input buffer to its corresponding output.
        input_output_aliases={i: i for i in range(len(flats))},
    )(*flats)
    # Restore the squeezed shapes (metadata-only).
    return tuple(o.reshape(a.shape) for o, a in zip(outs, arrs))


@jax.jit
def model_forward(x, y, z, w):
    # torch.squeeze(x, 0)
    x_s = jnp.squeeze(x, axis=0)
    # torch.squeeze(y, 1)
    y_s = jnp.squeeze(y, axis=1)
    # torch.squeeze(z) -> removes ALL size-1 dims
    z_s = jnp.squeeze(z)
    # torch.squeeze(w, 2)
    w_s = jnp.squeeze(w, axis=2)
    return fused_pallas_copy((x_s, y_s, z_s, w_s))


if __name__ == "__main__":
    key = jax.random.PRNGKey(0)
    kx, ky, kz, kw = jax.random.split(key, 4)

    # Shapes chosen so each squeeze is well-defined (size-1 on the squeezed dim).
    x = jax.random.normal(kx, (1, 3, 16), dtype=jnp.float32)    # squeeze(0) -> (3, 16)
    y = jax.random.normal(ky, (5, 1, 11), dtype=jnp.float32)    # squeeze(1) -> (5, 11)
    z = jax.random.normal(kz, (3, 1, 8, 1), dtype=jnp.float32)  # squeeze()  -> (3, 8)
    w = jax.random.normal(kw, (2, 4, 1, 9), dtype=jnp.float32)  # squeeze(2) -> (2, 4, 9)

    outs = model_forward(x, y, z, w)
    outs = jax.block_until_ready(outs)

    # Verify against pure-JAX reference semantics (same as torch.squeeze).
    refs = (
        jnp.squeeze(x, axis=0),
        jnp.squeeze(y, axis=1),
        jnp.squeeze(z),
        jnp.squeeze(w, axis=2),
    )
    expected_shapes = [(3, 16), (5, 11), (3, 8), (2, 4, 9)]
    for o, r, es in zip(outs, refs, expected_shapes):
        assert o.shape == es, (o.shape, es)
        assert o.dtype == r.dtype
        assert jnp.array_equal(o, r)

    print("KERNEL_OK")
</pallas_src>

<mosaic_0001>
module attributes {stable_mosaic.version = 11 : i64} {
  func.func @_fused_copy_kernel(%arg0: memref<1x48xf32, #tpu.memory_space<vmem>>, %arg1: memref<1x55xf32, #tpu.memory_space<vmem>>, %arg2: memref<1x24xf32, #tpu.memory_space<vmem>>, %arg3: memref<1x72xf32, #tpu.memory_space<vmem>>, %arg4: memref<1x48xf32, #tpu.memory_space<vmem>>, %arg5: memref<1x55xf32, #tpu.memory_space<vmem>>, %arg6: memref<1x24xf32, #tpu.memory_space<vmem>>, %arg7: memref<1x72xf32, #tpu.memory_space<vmem>>) attributes {dimension_semantics = [], scalar_prefetch = 0 : i64, scratch_operands = 0 : i64, tpu.core_type = #tpu.core_type<tc>} {
    %c0 = arith.constant 0 : index
    %c0_0 = arith.constant 0 : index
    %0 = vector.load %arg0[%c0, %c0_0] : memref<1x48xf32, #tpu.memory_space<vmem>>, vector<1x48xf32>
    %c0_1 = arith.constant 0 : index
    %c0_2 = arith.constant 0 : index
    %1 = vector.load %arg4[%c0_1, %c0_2] : memref<1x48xf32, #tpu.memory_space<vmem>>, vector<1x48xf32>
    tpu.vector_store %arg4[%c0_1, %c0_2], %0 {strides = array<i32>} : memref<1x48xf32, #tpu.memory_space<vmem>>, vector<1x48xf32>,
    %c0_3 = arith.constant 0 : index
    %c0_4 = arith.constant 0 : index
    %2 = vector.load %arg1[%c0_3, %c0_4] : memref<1x55xf32, #tpu.memory_space<vmem>>, vector<1x55xf32>
    %c0_5 = arith.constant 0 : index
    %c0_6 = arith.constant 0 : index
    %3 = vector.load %arg5[%c0_5, %c0_6] : memref<1x55xf32, #tpu.memory_space<vmem>>, vector<1x55xf32>
    tpu.vector_store %arg5[%c0_5, %c0_6], %2 {strides = array<i32>} : memref<1x55xf32, #tpu.memory_space<vmem>>, vector<1x55xf32>,
    %c0_7 = arith.constant 0 : index
    %c0_8 = arith.constant 0 : index
    %4 = vector.load %arg2[%c0_7, %c0_8] : memref<1x24xf32, #tpu.memory_space<vmem>>, vector<1x24xf32>
    %c0_9 = arith.constant 0 : index
    %c0_10 = arith.constant 0 : index
    %5 = vector.load %arg6[%c0_9, %c0_10] : memref<1x24xf32, #tpu.memory_space<vmem>>, vector<1x24xf32>
    tpu.vector_store %arg6[%c0_9, %c0_10], %4 {strides = array<i32>} : memref<1x24xf32, #tpu.memory_space<vmem>>, vector<1x24xf32>,
    %c0_11 = arith.constant 0 : index
    %c0_12 = arith.constant 0 : index
    %6 = vector.load %arg3[%c0_11, %c0_12] : memref<1x72xf32, #tpu.memory_space<vmem>>, vector<1x72xf32>
    %c0_13 = arith.constant 0 : index
    %c0_14 = arith.constant 0 : index
    %7 = vector.load %arg7[%c0_13, %c0_14] : memref<1x72xf32, #tpu.memory_space<vmem>>, vector<1x72xf32>
    tpu.vector_store %arg7[%c0_13, %c0_14], %6 {strides = array<i32>} : memref<1x72xf32, #tpu.memory_space<vmem>>, vector<1x72xf32>,
    return
  }
}

</mosaic_0001>

<bundles_post_ra>
// kernel: squeeze.6
= control target key start
LH: loop header
LB: loop body
LE: loop exit
PB: predicated region body
PF: predicated region fallthrough
CT: control target
= control target key end

     0   :  { %vm7_vm0 = vcmask 64512   ;;  %s30_s8 = smov 8   ;;  %vm13_vm1 = vcmask 195712   ;;  %vm19_vm2 = vcmask 130112   ;;  %s47_s0 = inlined_call_operand.vmem [shape: f32[3,8], index: 0, kind: input, shape index: {}]   ;;  %s48_s1 = inlined_call_operand.vmem [shape: f32[1,24], index: 1, kind: output, shape index: {}]  }
   0x1   :  { %v4_v0 = vld [vmem:[%s47_s0] sm:$0xf]  ;;  %s29_s0 = smov 16  }
   0x2   :  { %5 = vst [vmem:[#allocation1] sm:$0xf] %v4_v0 }
   0x9   :  { %v10_v1 = vld [vmem:[#allocation1 + $0x2] sm:$0x1]   ;;  %v6_v2 = vld [vmem:[#allocation1] sm:$0x1]   ;;  %v16_v3 = vld [vmem:[#allocation1 + $0x1] sm:$0x1]  }
   0xa   :  { %11 = vrot.lane.b32.xlu0 %v10_v1, %s29_s0  ;;  %8 = vst.msk [vmem:[#allocation0] sm:$0x1] %vm7_vm0, %v6_v2  }
   0xe   :  { %17 = vrot.lane.b32.xlu0 %v16_v3, %s30_s8 }
  0x7c   :  { %v12_v4 = vpop.permute.xlu0 %11  }
  0x7d   :  { %14 = vst.msk [vmem:[#allocation0] sm:$0x1] %vm13_vm1, %v12_v4  }
  0x80   :  { %v18_v5 = vpop.permute.xlu0 %17  }
  0x81   :  { %20 = vst.msk [vmem:[#allocation0] sm:$0x1] %vm19_vm2, %v18_v5  }
  0x88   :  { %v24_v6 = vld [vmem:[#allocation0] sm:$0x1] }
  0x89   :  { %26 = vst [vmem:[%s48_s1] sm:$0x1] %v24_v6 }

// kernel: squeeze.4
= control target key start
LH: loop header
LB: loop body
LE: loop exit
PB: predicated region body
PF: predicated region fallthrough
CT: control target
= control target key end

     0   :  { %vm7_vm0 = vcmask 130048   ;;  %s30_s8 = smov 16   ;;  %vm13_vm1 = vcmask 392448   ;;  %vm19_vm2 = vcmask 261248   ;;  %s47_s0 = inlined_call_operand.vmem [shape: f32[3,16], index: 0, kind: input, shape index: {}]   ;;  %s48_s1 = inlined_call_operand.vmem [shape: f32[1,48], index: 1, kind: output, shape index: {}]  }
   0x1   :  { %v4_v0 = vld [vmem:[%s47_s0] sm:$0xf]  ;;  %s29_s0 = smov 32  }
   0x2   :  { %5 = vst [vmem:[#allocation1] sm:$0xf] %v4_v0 }
   0x9   :  { %v10_v1 = vld [vmem:[#allocation1 + $0x2] sm:$0x1]   ;;  %v6_v2 = vld [vmem:[#allocation1] sm:$0x1]   ;;  %v16_v3 = vld [vmem:[#allocation1 + $0x1] sm:$0x1]  }
   0xa   :  { %11 = vrot.lane.b32.xlu0 %v10_v1, %s29_s0  ;;  %8 = vst.msk [vmem:[#allocation0] sm:$0x1] %vm7_vm0, %v6_v2  }
   0xe   :  { %17 = vrot.lane.b32.xlu0 %v16_v3, %s30_s8 }
  0x7c   :  { %v12_v4 = vpop.permute.xlu0 %11  }
  0x7d   :  { %14 = vst.msk [vmem:[#allocation0] sm:$0x1] %vm13_vm1, %v12_v4  }
  0x80   :  { %v18_v5 = vpop.permute.xlu0 %17  }
  0x81   :  { %20 = vst.msk [vmem:[#allocation0] sm:$0x1] %vm19_vm2, %v18_v5  }
  0x88   :  { %v24_v6 = vld [vmem:[#allocation0] sm:$0x1] }
  0x89   :  { %26 = vst [vmem:[%s48_s1] sm:$0x1] %v24_v6 }

// kernel: squeeze.7
= control target key start
LH: loop header
LB: loop body
LE: loop exit
PB: predicated region body
PF: predicated region fallthrough
CT: control target
= control target key end

     0   :  { %vm11_vm0 = vcmask 72704   ;;  %s70_s10 = smov 45   ;;  %s71_s11 = smov 54   ;;  %vm17_vm1 = vcmask 589304   ;;  %vm23_vm2 = vcmask 515504   ;;  %vm29_vm3 = vcmask 441704   ;;  %s95_s0 = inlined_call_operand.vmem [shape: f32[2,4,9], index: 0, kind: input, shape index: {}]   ;;  %s96_s1 = inlined_call_operand.vmem [shape: f32[1,72], index: 1, kind: output, shape index: {}]  }
   0x1   :  { %v61_v0 = vld [vmem:[%s95_s0 + $0x4] sm:$0xf]  ;;  %v8_v1 = vld [vmem:[%s95_s0] sm:$0xf]  ;;  %s69_s0 = smov 63   ;;  %s72_s12 = smov 36  }
   0x2   :  { %7 = vst [vmem:[#allocation1 + $0x8] sm:$0xf] %v61_v0  ;;  %9 = vst [vmem:[#allocation1] sm:$0xf] %v8_v1  ;;  %s73_s13 = smov 27   ;;  %s74_s14 = smov 18  }
   0x3   :  { %s75_s15 = smov 9   ;;  %vm35_vm4 = vcmask 367904   ;;  %vm41_vm5 = vcmask 294104   ;;  %vm47_vm6 = vcmask 220304   ;;  %vm53_vm7 = vcmask 146504  }
   0x9   :  { %v14_v2 = vld [vmem:[#allocation1 + $0xb] sm:$0x1]   ;;  %v26_v3 = vld [vmem:[#allocation1 + $0x9] sm:$0x1]   ;;  %v20_v4 = vld [vmem:[#allocation1 + $0xa] sm:$0x1]  }
   0xa   :  { %15 = vrot.lane.b32.xlu0 %v14_v2, %s69_s0  ;;  %27 = vrot.lane.b32.xlu1 %v26_v3, %s70_s10  ;;  %v32_v5 = vld [vmem:[#allocation1 + $0x8] sm:$0x1]   ;;  %v10_v6 = vld [vmem:[#allocation1] sm:$0x1]   ;;  %v38_v7 = vld [vmem:[#allocation1 + $0x3] sm:$0x1]  }
   0xb   :  { %12 = vst.msk [vmem:[#allocation0] sm:$0x1] %vm11_vm0, %v10_v6   ;;  %v44_v8 = vld [vmem:[#allocation1 + $0x2] sm:$0x1]   ;;  %v50_v9 = vld [vmem:[#allocation1 + $0x1] sm:$0x1]  }
   0xe   :  { %21 = vrot.lane.b32.xlu0 %v20_v4, %s71_s11  ;;  %33 = vrot.lane.b32.xlu1 %v32_v5, %s72_s12 }
  0x12   :  { %39 = vrot.lane.b32.xlu0 %v38_v7, %s73_s13  ;;  %45 = vrot.lane.b32.xlu1 %v44_v8, %s74_s14 }
  0x16   :  { %51 = vrot.lane.b32.xlu0 %v50_v9, %s75_s15 }
  0x7c   :  { %v16_v10 = vpop.permute.xlu0 %15   ;;  %v28_v11 = vpop.permute.xlu1 %27  }
  0x7d   :  { %18 = vst.msk [vmem:[#allocation0] sm:$0x1] %vm17_vm1, %v16_v10  }
  0x80   :  { %v22_v12 = vpop.permute.xlu0 %21   ;;  %v34_v13 = vpop.permute.xlu1 %33  }
  0x81   :  { %24 = vst.msk [vmem:[#allocation0] sm:$0x1] %vm23_vm2, %v22_v12  }
  0x82   :  { %30 = vst.msk [vmem:[#allocation0] sm:$0x1] %vm29_vm3, %v28_v11  }
  0x83   :  { %36 = vst.msk [vmem:[#allocation0] sm:$0x1] %vm35_vm4, %v34_v13  }
  0x84   :  { %v40_v14 = vpop.permute.xlu0 %39   ;;  %v46_v15 = vpop.permute.xlu1 %45  }
  0x85   :  { %42 = vst.msk [vmem:[#allocation0] sm:$0x1] %vm41_vm5, %v40_v14  }
  0x86   :  { %48 = vst.msk [vmem:[#allocation0] sm:$0x1] %vm47_vm6, %v46_v15  }
  0x88   :  { %v52_v16 = vpop.permute.xlu0 %51  }
  0x89   :  { %54 = vst.msk [vmem:[#allocation0] sm:$0x1] %vm53_vm7, %v52_v16  }
  0x90   :  { %v58_v17 = vld [vmem:[#allocation0] sm:$0x1] }
  0x91   :  { %60 = vst [vmem:[%s96_s1] sm:$0x1] %v58_v17 }

// kernel: squeeze.5
= control target key start
LH: loop header
LB: loop body
LE: loop exit
PB: predicated region body
PF: predicated region fallthrough
CT: control target
= control target key end

     0   :  { %s43_s10 = smov 44   ;;  %s44_s11 = smov 22   ;;  %vm3_vm0 = vcmask 89088   ;;  %vm9_vm1 = vcmask 449888   ;;  %vm15_vm2 = vcmask 359688   ;;  %vm21_vm3 = vcmask 269488   ;;  %s75_s0 = inlined_call_operand.vmem [shape: f32[5,11], index: 0, kind: input, shape index: {}]   ;;  %s76_s1 = inlined_call_operand.vmem [shape: f32[1,55], index: 1, kind: output, shape index: {}]  }
   0x1   :  { %v35_v0 = vld [vmem:[%s75_s0 + $0x4] sm:$0x1]   ;;  %v37_v1 = vld [vmem:[%s75_s0 + $0x2] sm:$0x1]   ;;  %v36_v2 = vld [vmem:[%s75_s0 + $0x3] sm:$0x1]  }
   0x2   :  { %7 = vrot.lane.b32.xlu0 %v35_v0, %s43_s10  ;;  %19 = vrot.lane.b32.xlu1 %v37_v1, %s44_s11  ;;  %v38_v3 = vld [vmem:[%s75_s0 + $0x1] sm:$0x1]   ;;  %v2_v4 = vld [vmem:[%s75_s0] sm:$0x1]   ;;  %s45_s0 = smov 33   ;;  %s46_s18 = smov 11  }
   0x3   :  { %4 = vst.msk [vmem:[#allocation0] sm:$0x1] %vm3_vm0, %v2_v4   ;;  %vm27_vm4 = vcmask 179288  }
   0x6   :  { %13 = vrot.lane.b32.xlu0 %v36_v2, %s45_s0  ;;  %25 = vrot.lane.b32.xlu1 %v38_v3, %s46_s18 }
  0x74   :  { %v8_v5 = vpop.permute.xlu0 %7   ;;  %v20_v6 = vpop.permute.xlu1 %19  }
  0x75   :  { %10 = vst.msk [vmem:[#allocation0] sm:$0x1] %vm9_vm1, %v8_v5  }
  0x78   :  { %v14_v7 = vpop.permute.xlu0 %13   ;;  %v26_v8 = vpop.permute.xlu1 %25  }
  0x79   :  { %16 = vst.msk [vmem:[#allocation0] sm:$0x1] %vm15_vm2, %v14_v7  }
  0x7a   :  { %22 = vst.msk [vmem:[#allocation0] sm:$0x1] %vm21_vm3, %v20_v6  }
  0x7b   :  { %28 = vst.msk [vmem:[#allocation0] sm:$0x1] %vm27_vm4, %v26_v8  }
  0x82   :  { %v32_v9 = vld [vmem:[#allocation0] sm:$0x1] }
  0x83   :  { %34 = vst [vmem:[%s76_s1] sm:$0x1] %v32_v9 }

// kernel: model_forward.1
= control target key start
LH: loop header
LB: loop body
LE: loop exit
PB: predicated region body
PF: predicated region fallthrough
CT: control target
= control target key end

     0   :  { %vm22_vm0 = vcmask 385024   ;;  %vm25_vm1 = vcmask 442368   ;;  %vm28_vm2 = vcmask 188416   ;;  %vm31_vm3 = vcmask 581632   ;;  %s113_s0 = inlined_call_operand.vmem [shape: f32[1,48], index: 0, kind: input, shape index: {}, may-alias: {0,4}]   ;;  %s114_s4 = inlined_call_operand.vmem [shape: f32[1,48], index: 4, kind: output, shape index: {0}, may-alias: {0,4}]   ;;  %s115_s1 = inlined_call_operand.vmem [shape: f32[1,55], index: 1, kind: input, shape index: {}, may-alias: {1,5}]   ;;  %s116_s5 = inlined_call_operand.vmem [shape: f32[1,55], index: 5, kind: output, shape index: {1}, may-alias: {1,5}]   ;;  %s117_s2 = inlined_call_operand.vmem [shape: f32[1,24], index: 2, kind: input, shape index: {}, may-alias: {2,6}]   ;;  %s118_s6 = inlined_call_operand.vmem [shape: f32[1,24], index: 6, kind: output, shape index: {2}, may-alias: {2,6}]   ;;  %s119_s3 = inlined_call_operand.vmem [shape: f32[1,72], index: 3, kind: input, shape index: {}, may-alias: {3,7}]   ;;  %s120_s7 = inlined_call_operand.vmem [shape: f32[1,72], index: 7, kind: output, shape index: {3}, may-alias: {3,7}]  }
   0x1   :  { %v21_v0 = vld [vmem:[%s113_s0] sm:$0x1] }
   0x2   :  { %v24_v1 = vld [vmem:[%s115_s1] sm:$0x1]  ;;  %23 = vst.msk [vmem:[%s114_s4] sm:$0x1] %vm22_vm0, %v21_v0 }
   0x3   :  { %v27_v2 = vld [vmem:[%s117_s2] sm:$0x1]  ;;  %26 = vst.msk [vmem:[%s116_s5] sm:$0x1] %vm25_vm1, %v24_v1 }
   0x4   :  { %29 = vst.msk [vmem:[%s118_s6] sm:$0x1] %vm28_vm2, %v27_v2  ;;  %v30_v3 = vld [vmem:[%s119_s3] sm:$0x1] }
   0x5   :  { %32 = vst.msk [vmem:[%s120_s7] sm:$0x1] %vm31_vm3, %v30_v3 }

</bundles_post_ra>
